<compile_context>
chip_gen: v7x
topology: tpu7x:2x2x1
jax: 0.10.0
libtpu: 0.0.40
codegen_flags: <defaults>
</compile_context>

<pallas_src>
import numpy as np
import jax
import jax.numpy as jnp
from jax.experimental import pallas as pl
from jax.experimental.pallas import tpu as pltpu
from jax.scipy.linalg import block_diag

# ---------------- config (small synthetic shapes) ----------------
BATCH = 2
IN_CH = 3
IMG_H = IMG_W = 16
HIDDEN = 32            # cfg.hidden_dim
NQ = 8                 # cfg.num_queries
FEAT_H = IMG_H // 4    # spatial size of img_feat (1/4-scale feature)
FEAT_W = IMG_W // 4
UP = 4                 # upsamplex4
OUT_H = FEAT_H * UP
OUT_W = FEAT_W * UP
HEAD_MID = 32          # to_pred hidden channels
BN_EPS = 1e-5
VIS_TOKEN = True


# ---------------- bilinear (align_corners=False) interpolation matrices ----------------
def bilinear_matrix(n_in, scale):
    n_out = n_in * scale
    dst = np.arange(n_out)
    src = (dst + 0.5) / scale - 0.5
    src = np.clip(src, 0.0, None)            # PyTorch clamps negative source idx to 0
    i0 = np.minimum(np.floor(src).astype(np.int64), n_in - 1)
    i1 = np.minimum(i0 + 1, n_in - 1)
    l1 = src - i0
    l0 = 1.0 - l1
    W = np.zeros((n_out, n_in), np.float32)
    W[np.arange(n_out), i0] += l0
    W[np.arange(n_out), i1] += l1
    return W


# ---------------- fused Pallas kernel ----------------
# One invocation computes, entirely in VMEM/vregs:
#   scores for (A,B) x batch     : 1 matmul  [2B*Q,2B*C] @ [2B*C,hw]
#   softmax over q per group     : 4 tiny sublane reductions
#   conv1 (BN folded), commuted  : 1 matmul  [B*MID,2B*Q] @ [2B*Q,hw]
#   bilinear x4 upsample         : 1 matmul  [B*MID,hw]   @ [hw,HW]
#   bias + ReLU + conv2 + bias   : 1 matmul  [B*2,B*MID]  @ [B*MID,HW]
def _make_kernel(vis_token, nq):
    def kernel(tok_bd_ref, f_ref, mT_ref, w1_ref, b1_ref, w2_ref, b2_ref, *out_refs):
        if vis_token:
            p_ref, pred_ref = out_refs
        else:
            (pred_ref,) = out_refs

        # ONE MXU pass for every (batch, A|B) score map.
        s = jnp.dot(tok_bd_ref[...], f_ref[...],
                    preferred_element_type=jnp.float32)            # [2B*Q, hw]

        # softmax over the query axis within each (batch, A|B) group of nq rows
        n_groups = s.shape[0] // nq
        parts = []
        for g in range(n_groups):                                   # static, 4 groups
            sg = s[g * nq:(g + 1) * nq, :]
            mg = jnp.max(sg, axis=0, keepdims=True)
            eg = jnp.exp(sg - mg)
            parts.append(eg / jnp.sum(eg, axis=0, keepdims=True))
        p = jnp.concatenate(parts, axis=0)                          # [2B*Q, hw] rows=[A0,B0,A1,B1]

        if vis_token:
            p_ref[...] = p

        # 1x1 conv1 (+BN scale folded) commuted BEFORE the upsample; both
        # batches at once via the block-diagonal weight.
        h_small = jnp.dot(w1_ref[...], p,
                          preferred_element_type=jnp.float32)       # [B*MID, hw]

        # bilinear x4 upsample of all batches/channels in ONE matmul
        up = jnp.dot(h_small, mT_ref[...],
                     preferred_element_type=jnp.float32)            # [B*MID, HW]

        h = jnp.maximum(up + b1_ref[...], 0.0)                      # folded bias+BN shift, ReLU

        # 1x1 conv2 for both batches -> lane-dense [B*2, HW] store
        pred_ref[...] = jnp.dot(w2_ref[...], h,
                                preferred_element_type=jnp.float32) + b2_ref[...]

    return kernel


def run_fused(tok_bd, f_all, mT, w1_bd, b1_t, w2_bd, b2_t, *, vis_token):
    nq_tot = tok_bd.shape[0]            # 2B*Q
    hw = f_all.shape[-1]
    HW = mT.shape[-1]
    bo = w2_bd.shape[0]                 # B*2

    out_shape = []
    if vis_token:
        out_shape.append(jax.ShapeDtypeStruct((nq_tot, hw), jnp.float32))   # pA0|pB0|pA1|pB1
    out_shape.append(jax.ShapeDtypeStruct((bo, HW), jnp.float32))           # pred, lane-dense

    vmem = pl.BlockSpec(memory_space=pltpu.MemorySpace.VMEM)
    # Gridless single invocation: the largest operand (mT) is 16 KiB, so every
    # operand sits in VMEM for the whole call; blocking/pipelining would be
    # pure per-step overhead at these shapes (see production TODO above).
    return pl.pallas_call(
        _make_kernel(vis_token, NQ),
        out_shape=tuple(out_shape),
        in_specs=[vmem] * 7,
        out_specs=tuple([vmem] * len(out_shape)),
    )(tok_bd, f_all, mT, w1_bd, b1_t, w2_bd, b2_t)


# ---------------- stand-in backbone / token generator (plain JAX glue) ----------------
def encoder_decoder_standin(x, proj_w):
    # TODO(synk): multi_scale_encoder_decoder definition not provided in source; deterministic stand-in
    B, C, H, W = x.shape
    x4 = x.reshape(B, C, H // 4, 4, W // 4, 4).mean(axis=(3, 5))      # [B, 3, H/4, W/4]
    f3 = jnp.einsum('oc,bchw->bohw', proj_w, x4)                      # [B, HIDDEN, H/4, W/4]
    return [x4, x4, f3]


def rrgm_standin(featsA, featsB, q_emb):
    # TODO(synk): RRGM definition not provided in source; deterministic stand-in producing [B, Q, C]
    d = featsA[2] - featsB[2]                # [B, C, h, w]
    g = d.mean(axis=(2, 3))                  # [B, C]
    return jnp.tanh(g[:, None, :] * q_emb[None, :, :])   # [B, Q, C]


# ---------------- per-forward operand packing (layout plumbing only) ----------------
def pack_inputs(token, img_featA, img_featB):
    Bsz, C, h, w = img_featA.shape
    hw = h * w
    fa = img_featA.reshape(Bsz, 1, C, hw)
    fb = img_featB.reshape(Bsz, 1, C, hw)
    # channel-stacked features, row groups ordered [A0, B0, A1, B1]
    f_all = jnp.concatenate([fa, fb], axis=1).reshape(Bsz * 2 * C, hw)   # [2B*C, hw]
    # block-diagonal token: block g uses token[g // 2]
    blocks = [token[b] for b in range(Bsz) for _ in range(2)]
    tok_bd = block_diag(*blocks)                                         # [2B*Q, 2B*C]
    return tok_bd, f_all


# ---------------- full forward ----------------
def strobustnet_forward(A, B, params):
    featsA = encoder_decoder_standin(A, params['enc_proj'])
    featsB = encoder_decoder_standin(B, params['enc_proj'])
    img_featA = featsA[2]                    # [B, C, h, w]
    img_featB = featsB[2]
    token = rrgm_standin(featsA, featsB, params['q_emb'])   # [B, Q, C]

    Bsz, C, h, w = img_featA.shape
    tok_bd, f_all = pack_inputs(token, img_featA, img_featB)

    outs = run_fused(tok_bd, f_all, params['mT'],
                     params['w1f_bd'], params['b1f_t'],
                     params['w2_bd'], params['b2_t'],
                     vis_token=VIS_TOKEN)

    if VIS_TOKEN:
        p_all, pred_flat = outs
    else:
        (pred_flat,) = outs

    pred = pred_flat.reshape(Bsz, 2, OUT_H, OUT_W)
    if VIS_TOKEN:
        vis = p_all.reshape(Bsz, 2, NQ, h, w)        # [b, A|B, q, h, w]
        return pred, vis[:, 0], vis[:, 1]
    return pred


# ---------------- pure-JAX reference of the kernelized portion ----------------
def reference(token, img_featA, img_featB, Wr, Wc, params):
    sA = jnp.einsum('bqc,bchw->bqhw', token, img_featA)
    sB = jnp.einsum('bqc,bchw->bqhw', token, img_featB)
    pA = jax.nn.softmax(sA, axis=1)
    pB = jax.nn.softmax(sB, axis=1)
    cat = jnp.concatenate([pA, pB], axis=1)                              # [B, 2Q, h, w]
    up = jnp.einsum('Hh,Ww,bchw->bcHW', Wr, Wc, cat)                     # bilinear x4
    h1 = jnp.einsum('bchw,cm->bmhw', up, params['w1']) + params['b1'][0][None, :, None, None]
    h1 = h1 * params['bn_scale'][0][None, :, None, None] + params['bn_shift'][0][None, :, None, None]
    h1 = jnp.maximum(h1, 0.0)
    pred = jnp.einsum('bchw,cm->bmhw', h1, params['w2']) + params['b2'][0][None, :, None, None]
    return pred, pA, pB


if __name__ == "__main__":
    key = jax.random.PRNGKey(0)
    ks = jax.random.split(key, 10)

    # deterministic parameter init (shapes follow the module's __init__)
    enc_proj = 0.1 * jax.random.normal(ks[0], (HIDDEN, IN_CH), jnp.float32)
    q_emb = 0.1 * jax.random.normal(ks[1], (NQ, HIDDEN), jnp.float32)
    w1 = 0.1 * jax.random.normal(ks[2], (2 * NQ, HEAD_MID), jnp.float32)   # Conv2d(2Q,32,1) weight [Cin,Cout]
    b1 = 0.05 * jax.random.normal(ks[3], (1, HEAD_MID), jnp.float32)
    w2 = 0.1 * jax.random.normal(ks[4], (HEAD_MID, 2), jnp.float32)        # Conv2d(32,2,1) weight [Cin,Cout]
    b2 = 0.05 * jax.random.normal(ks[5], (1, 2), jnp.float32)
    # BatchNorm2d(32), eval-mode running stats (fresh init: mean=0, var=1, gamma=1, beta=0)
    gamma = jnp.ones((HEAD_MID,), jnp.float32)
    beta = jnp.zeros((HEAD_MID,), jnp.float32)
    run_mean = jnp.zeros((HEAD_MID,), jnp.float32)
    run_var = jnp.ones((HEAD_MID,), jnp.float32)
    bn_scale = (gamma / jnp.sqrt(run_var + BN_EPS)).reshape(1, HEAD_MID)
    bn_shift = (beta - run_mean * bn_scale[0]).reshape(1, HEAD_MID)

    Wr = bilinear_matrix(FEAT_H, UP)                 # [OUT_H, FEAT_H]
    Wc = bilinear_matrix(FEAT_W, UP)                 # [OUT_W, FEAT_W]
    M = np.kron(Wr, Wc)                              # [OUT_H*OUT_W, FEAT_H*FEAT_W]
    mT = jnp.asarray(M.T)                            # [hw, HW] (16 KiB at these shapes)

    # offline folding: conv1 bias + BN(eval) into the conv1 weight/bias, then
    # block-diagonal / tiled versions so the whole batch runs as one matmul chain
    sc_col = bn_scale.reshape(HEAD_MID, 1)
    w1f = jnp.transpose(w1) * sc_col                               # [MID, 2Q]
    b1f = b1.reshape(HEAD_MID, 1) * sc_col + bn_shift.reshape(HEAD_MID, 1)   # [MID, 1]
    w2t = jnp.transpose(w2)                                        # [2, MID]
    w1f_bd = block_diag(*([w1f] * BATCH))                          # [B*MID, B*2Q]
    b1f_t = jnp.tile(b1f, (BATCH, 1))                              # [B*MID, 1]
    w2_bd = block_diag(*([w2t] * BATCH))                           # [B*2, B*MID]
    b2_t = jnp.tile(b2.reshape(2, 1), (BATCH, 1))                  # [B*2, 1]

    params = dict(enc_proj=enc_proj, q_emb=q_emb,
                  w1=w1, b1=b1, w2=w2, b2=b2, bn_scale=bn_scale, bn_shift=bn_shift,
                  mT=mT, w1f_bd=w1f_bd, b1f_t=b1f_t, w2_bd=w2_bd, b2_t=b2_t)

    A = jax.random.normal(ks[6], (BATCH, IN_CH, IMG_H, IMG_W), jnp.float32)
    B = jax.random.normal(ks[7], (BATCH, IN_CH, IMG_H, IMG_W), jnp.float32)

    pred, pred_A, pred_B = strobustnet_forward(A, B, params)
    jax.block_until_ready((pred, pred_A, pred_B))

    # correctness check of the kernelized hot path against a plain-JAX reference
    featsA = encoder_decoder_standin(A, enc_proj)
    featsB = encoder_decoder_standin(B, enc_proj)
    token = rrgm_standin(featsA, featsB, q_emb)
    ref_pred, ref_pA, ref_pB = reference(token, featsA[2], featsB[2],
                                         jnp.asarray(Wr), jnp.asarray(Wc), params)

    assert pred.shape == (BATCH, 2, OUT_H, OUT_W)
    assert pred_A.shape == (BATCH, NQ, FEAT_H, FEAT_W)
    assert pred_B.shape == (BATCH, NQ, FEAT_H, FEAT_W)
    np.testing.assert_allclose(np.asarray(pred_A), np.asarray(ref_pA), atol=1e-5, rtol=1e-5)
    np.testing.assert_allclose(np.asarray(pred_B), np.asarray(ref_pB), atol=1e-5, rtol=1e-5)
    np.testing.assert_allclose(np.asarray(pred), np.asarray(ref_pred), atol=1e-4, rtol=1e-4)

    print("KERNEL_OK")
</pallas_src>

<mosaic_0001>
module attributes {stable_mosaic.version = 11 : i64} {
  func.func @kernel(%arg0: memref<32x128xf32, #tpu.memory_space<vmem>>, %arg1: memref<128x16xf32, #tpu.memory_space<vmem>>, %arg2: memref<16x256xf32, #tpu.memory_space<vmem>>, %arg3: memref<64x32xf32, #tpu.memory_space<vmem>>, %arg4: memref<64x1xf32, #tpu.memory_space<vmem>>, %arg5: memref<4x64xf32, #tpu.memory_space<vmem>>, %arg6: memref<4x1xf32, #tpu.memory_space<vmem>>, %arg7: memref<32x16xf32, #tpu.memory_space<vmem>>, %arg8: memref<4x256xf32, #tpu.memory_space<vmem>>) attributes {dimension_semantics = [], scalar_prefetch = 0 : i64, scratch_operands = 0 : i64, tpu.core_type = #tpu.core_type<tc>} {
    %c0 = arith.constant 0 : index
    %c0_0 = arith.constant 0 : index
    %0 = vector.load %arg0[%c0, %c0_0] : memref<32x128xf32, #tpu.memory_space<vmem>>, vector<32x128xf32>
    %c0_1 = arith.constant 0 : index
    %c0_2 = arith.constant 0 : index
    %1 = vector.load %arg1[%c0_1, %c0_2] : memref<128x16xf32, #tpu.memory_space<vmem>>, vector<128x16xf32>
    %cst = arith.constant dense<0.000000e+00> : vector<32x16xf32>
    %2 = tpu.matmul %0, %1, %cst {dimension_numbers = #tpu.dot_dimension_numbers<[1], [0], [0], [1], [0, 0, 1, 1], [], []>} : vector<32x128xf32>, vector<128x16xf32>, vector<32x16xf32> -> vector<32x16xf32>
    %3 = vector.extract_strided_slice %2 {offsets = [0, 0], sizes = [8, 16], strides = [1, 1]} : vector<32x16xf32> to vector<8x16xf32>
    %cst_3 = arith.constant dense<0xFF800000> : vector<16xf32>
    %4 = vector.multi_reduction <maximumf>, %3, %cst_3 [0] : vector<8x16xf32> to vector<16xf32>
    %5 = vector.shape_cast %4 : vector<16xf32> to vector<1x16xf32>
    %6 = vector.broadcast %5 : vector<1x16xf32> to vector<8x16xf32>
    %7 = arith.subf %3, %6 : vector<8x16xf32>
    %8 = math.exp %7 : vector<8x16xf32>
    %cst_4 = arith.constant dense<0.000000e+00> : vector<16xf32>
    %9 = vector.multi_reduction <add>, %8, %cst_4 [0] : vector<8x16xf32> to vector<16xf32>
    %10 = vector.shape_cast %9 : vector<16xf32> to vector<1x16xf32>
    %11 = vector.broadcast %10 : vector<1x16xf32> to vector<8x16xf32>
    %12 = arith.divf %8, %11 : vector<8x16xf32>
    %13 = vector.extract_strided_slice %2 {offsets = [8, 0], sizes = [8, 16], strides = [1, 1]} : vector<32x16xf32> to vector<8x16xf32>
    %cst_5 = arith.constant dense<0xFF800000> : vector<16xf32>
    %14 = vector.multi_reduction <maximumf>, %13, %cst_5 [0] : vector<8x16xf32> to vector<16xf32>
    %15 = vector.shape_cast %14 : vector<16xf32> to vector<1x16xf32>
    %16 = vector.broadcast %15 : vector<1x16xf32> to vector<8x16xf32>
    %17 = arith.subf %13, %16 : vector<8x16xf32>
    %18 = math.exp %17 : vector<8x16xf32>
    %cst_6 = arith.constant dense<0.000000e+00> : vector<16xf32>
    %19 = vector.multi_reduction <add>, %18, %cst_6 [0] : vector<8x16xf32> to vector<16xf32>
    %20 = vector.shape_cast %19 : vector<16xf32> to vector<1x16xf32>
    %21 = vector.broadcast %20 : vector<1x16xf32> to vector<8x16xf32>
    %22 = arith.divf %18, %21 : vector<8x16xf32>
    %23 = vector.extract_strided_slice %2 {offsets = [16, 0], sizes = [8, 16], strides = [1, 1]} : vector<32x16xf32> to vector<8x16xf32>
    %cst_7 = arith.constant dense<0xFF800000> : vector<16xf32>
    %24 = vector.multi_reduction <maximumf>, %23, %cst_7 [0] : vector<8x16xf32> to vector<16xf32>
    %25 = vector.shape_cast %24 : vector<16xf32> to vector<1x16xf32>
    %26 = vector.broadcast %25 : vector<1x16xf32> to vector<8x16xf32>
    %27 = arith.subf %23, %26 : vector<8x16xf32>
    %28 = math.exp %27 : vector<8x16xf32>
    %cst_8 = arith.constant dense<0.000000e+00> : vector<16xf32>
    %29 = vector.multi_reduction <add>, %28, %cst_8 [0] : vector<8x16xf32> to vector<16xf32>
    %30 = vector.shape_cast %29 : vector<16xf32> to vector<1x16xf32>
    %31 = vector.broadcast %30 : vector<1x16xf32> to vector<8x16xf32>
    %32 = arith.divf %28, %31 : vector<8x16xf32>
    %33 = vector.extract_strided_slice %2 {offsets = [24, 0], sizes = [8, 16], strides = [1, 1]} : vector<32x16xf32> to vector<8x16xf32>
    %cst_9 = arith.constant dense<0xFF800000> : vector<16xf32>
    %34 = vector.multi_reduction <maximumf>, %33, %cst_9 [0] : vector<8x16xf32> to vector<16xf32>
    %35 = vector.shape_cast %34 : vector<16xf32> to vector<1x16xf32>
    %36 = vector.broadcast %35 : vector<1x16xf32> to vector<8x16xf32>
    %37 = arith.subf %33, %36 : vector<8x16xf32>
    %38 = math.exp %37 : vector<8x16xf32>
    %cst_10 = arith.constant dense<0.000000e+00> : vector<16xf32>
    %39 = vector.multi_reduction <add>, %38, %cst_10 [0] : vector<8x16xf32> to vector<16xf32>
    %40 = vector.shape_cast %39 : vector<16xf32> to vector<1x16xf32>
    %41 = vector.broadcast %40 : vector<1x16xf32> to vector<8x16xf32>
    %42 = arith.divf %38, %41 : vector<8x16xf32>
    %43 = tpu.concatenate %12, %22, %32, %42 in 0 : vector<8x16xf32>, vector<8x16xf32>, vector<8x16xf32>, vector<8x16xf32> -> vector<32x16xf32>
    %c0_11 = arith.constant 0 : index
    %c0_12 = arith.constant 0 : index
    %44 = vector.load %arg7[%c0_11, %c0_12] : memref<32x16xf32, #tpu.memory_space<vmem>>, vector<32x16xf32>
    tpu.vector_store %arg7[%c0_11, %c0_12], %43 {strides = array<i32>} : memref<32x16xf32, #tpu.memory_space<vmem>>, vector<32x16xf32>,
    %c0_13 = arith.constant 0 : index
    %c0_14 = arith.constant 0 : index
    %45 = vector.load %arg3[%c0_13, %c0_14] : memref<64x32xf32, #tpu.memory_space<vmem>>, vector<64x32xf32>
    %cst_15 = arith.constant dense<0.000000e+00> : vector<64x16xf32>
    %46 = tpu.matmul %45, %43, %cst_15 {dimension_numbers = #tpu.dot_dimension_numbers<[1], [0], [0], [1], [0, 0, 1, 1], [], []>} : vector<64x32xf32>, vector<32x16xf32>, vector<64x16xf32> -> vector<64x16xf32>
    %c0_16 = arith.constant 0 : index
    %c0_17 = arith.constant 0 : index
    %47 = vector.load %arg2[%c0_16, %c0_17] : memref<16x256xf32, #tpu.memory_space<vmem>>, vector<16x256xf32>
    %cst_18 = arith.constant dense<0.000000e+00> : vector<64x256xf32>
    %48 = tpu.matmul %46, %47, %cst_18 {dimension_numbers = #tpu.dot_dimension_numbers<[1], [0], [0], [1], [0, 0, 1, 1], [], []>} : vector<64x16xf32>, vector<16x256xf32>, vector<64x256xf32> -> vector<64x256xf32>
    %c0_19 = arith.constant 0 : index
    %c0_20 = arith.constant 0 : index
    %49 = vector.load %arg4[%c0_19, %c0_20] : memref<64x1xf32, #tpu.memory_space<vmem>>, vector<64x1xf32>
    %50 = vector.broadcast %49 : vector<64x1xf32> to vector<64x256xf32>
    %51 = arith.addf %48, %50 : vector<64x256xf32>
    %cst_21 = arith.constant 0.000000e+00 : f32
    %52 = vector.broadcast %cst_21 : f32 to vector<64x256xf32>
    %53 = arith.maximumf %51, %52 : vector<64x256xf32>
    %c0_22 = arith.constant 0 : index
    %c0_23 = arith.constant 0 : index
    %54 = vector.load %arg5[%c0_22, %c0_23] : memref<4x64xf32, #tpu.memory_space<vmem>>, vector<4x64xf32>
    %cst_24 = arith.constant dense<0.000000e+00> : vector<4x256xf32>
    %55 = tpu.matmul %54, %53, %cst_24 {dimension_numbers = #tpu.dot_dimension_numbers<[1], [0], [0], [1], [0, 0, 1, 1], [], []>} : vector<4x64xf32>, vector<64x256xf32>, vector<4x256xf32> -> vector<4x256xf32>
    %c0_25 = arith.constant 0 : index
    %c0_26 = arith.constant 0 : index
    %56 = vector.load %arg6[%c0_25, %c0_26] : memref<4x1xf32, #tpu.memory_space<vmem>>, vector<4x1xf32>
    %57 = vector.broadcast %56 : vector<4x1xf32> to vector<4x256xf32>
    %58 = arith.addf %55, %57 : vector<4x256xf32>
    %c0_27 = arith.constant 0 : index
    %c0_28 = arith.constant 0 : index
    %59 = vector.load %arg8[%c0_27, %c0_28] : memref<4x256xf32, #tpu.memory_space<vmem>>, vector<4x256xf32>
    tpu.vector_store %arg8[%c0_27, %c0_28], %58 {strides = array<i32>} : memref<4x256xf32, #tpu.memory_space<vmem>>, vector<4x256xf32>,
    return
  }
}

</mosaic_0001>

<bundles_post_ra>
// kernel: tpu_custom_call.1
= control target key start
LH: loop header
LB: loop body
LE: loop exit
PB: predicated region body
PF: predicated region fallthrough
CT: control target
= control target key end

     0   :  { %s1101_s0 = inlined_call_operand.vmem [shape: f32[32,128], index: 0, kind: input, shape index: {}]   ;;  %s1102_s1 = inlined_call_operand.vmem [shape: f32[128,16], index: 1, kind: input, shape index: {}]   ;;  %s1103_s2 = inlined_call_operand.vmem [shape: f32[16,256], index: 2, kind: input, shape index: {}]   ;;  %s1104_s3 = inlined_call_operand.vmem [shape: f32[64,32], index: 3, kind: input, shape index: {}]   ;;  %s1105_s4 = inlined_call_operand.vmem [shape: f32[64,1], index: 4, kind: input, shape index: {}]   ;;  %s1106_s5 = inlined_call_operand.vmem [shape: f32[4,64], index: 5, kind: input, shape index: {}]   ;;  %s1107_s6 = inlined_call_operand.vmem [shape: f32[4,1], index: 6, kind: input, shape index: {}]   ;;  %s1108_s7 = inlined_call_operand.vmem [shape: f32[32,16], index: 7, kind: output, shape index: {0}]   ;;  %s1109_s8 = inlined_call_operand.hbm [shape: f32[4,256], index: 8, kind: output, shape index: {1}]  }
   0x1   :  { %v33_v0 = vld [vmem:[%s1102_s1] sm:$0xff]  ;;  %v34_v1 = vld [vmem:[%s1102_s1 + $0x8] sm:$0xff]  ;;  %v35_v2 = vld [vmem:[%s1102_s1 + $0x10] sm:$0xff] }
   0x2   :  { %v770_v3 = vpack.c.bf16 %v34_v1, %v33_v0  ;;  %v36_v4 = vld [vmem:[%s1102_s1 + $0x18] sm:$0xff]  ;;  %v37_v6 = vld [vmem:[%s1102_s1 + $0x20] sm:$0xff]  ;;  %v38_v7 = vld [vmem:[%s1102_s1 + $0x28] sm:$0xff] }
   0x3   :  { %v774_v5 = vpack.c.bf16 %v36_v4, %v35_v2  ;;  %v778_v8 = vpack.c.bf16 %v38_v7, %v37_v6  ;;  %v29_v9 = vld [vmem:[%s1101_s0] sm:$0xff]  ;;  %v39_v10 = vld [vmem:[%s1102_s1 + $0x30] sm:$0xff]  ;;  %v40_v11 = vld [vmem:[%s1102_s1 + $0x38] sm:$0xff] }
   0x4   :  { %771 = vmatprep.subr.bf16.mxu0 %v770_v3  ;;  %744 = vmatprep.mubr.f32.mxu0 %v29_v9 }
   0x5   :  { %773 = vmatpush3.bf16.msra.mxu0 %v770_v3 }
   0x6   :  { %775 = vmatprep.subr.bf16.mxu0 %v774_v5 }
   0x7   :  { %14 = vsyncpa [#allocation3], 0  ;;  %v782_v12 = vpack.c.bf16 %v40_v11, %v39_v10  ;;  %v41_v13 = vld [vmem:[%s1102_s1 + $0x40] sm:$0xff]  ;;  %v42_v14 = vld [vmem:[%s1102_s1 + $0x48] sm:$0xff]  ;;  %vm223_vm0 = vcmask 261120   ;;  %vm134_vm1 = vcmask 130048  }
   0x8   :  { %v786_v15 = vpack.c.bf16 %v42_v14, %v41_v13  ;;  %v43_v16 = vld [vmem:[%s1102_s1 + $0x50] sm:$0xff]  ;;  %v44_v17 = vld [vmem:[%s1102_s1 + $0x58] sm:$0xff]  ;;  %v45_v19 = vld [vmem:[%s1102_s1 + $0x60] sm:$0xff]  ;;  %vm565_vm2 = vcmask 523264   ;;  %s877_s21 = smov [#allocation2]  }
   0x9   :  { %777 = vmatpush3.bf16.msra.mxu0 %v774_v5  ;;  %v790_v18 = vpack.c.bf16 %v44_v17, %v43_v16  ;;  %v46_v20 = vld [vmem:[%s1102_s1 + $0x68] sm:$0xff]  ;;  %v47_v22 = vld [vmem:[%s1102_s1 + $0x70] sm:$0xff]  ;;  %v48_v23 = vld [vmem:[%s1102_s1 + $0x78] sm:$0xff] }
   0xa   :  { %779 = vmatprep.subr.bf16.mxu0 %v778_v8  ;;  %v794_v21 = vpack.c.bf16 %v46_v20, %v45_v19  ;;  %v798_v24 = vpack.c.bf16 %v48_v23, %v47_v22  ;;  %v30_v25 = vld [vmem:[%s1101_s0 + $0x8] sm:$0xff]  ;;  %v31_v26 = vld [vmem:[%s1101_s0 + $0x10] sm:$0xff]  ;;  %v32_v27 = vld [vmem:[%s1101_s0 + $0x18] sm:$0xff] }
   0xb   :  { %v215_v28 = vld [vmem:[%s1104_s3] sm:$0xff] }
   0xc   :  { %758 = vmatprep.mubr.msk.f32.mxu1 %vm223_vm0, %v215_v28 }
   0xd   :  { %781 = vmatpush3.bf16.msra.mxu0 %v778_v8 }
   0xe   :  { %783 = vmatprep.subr.bf16.mxu0 %v782_v12 }
  0x11   :  { %785 = vmatpush3.bf16.msra.mxu0 %v782_v12 }
  0x12   :  { %787 = vmatprep.subr.bf16.mxu0 %v786_v15 }
  0x15   :  { %789 = vmatpush3.bf16.msra.mxu0 %v786_v15 }
  0x16   :  { %791 = vmatprep.subr.bf16.mxu0 %v790_v18 }
  0x19   :  { %793 = vmatpush3.bf16.msra.mxu0 %v790_v18 }
  0x1a   :  { %795 = vmatprep.subr.bf16.mxu0 %v794_v21 }
  0x1d   :  { %797 = vmatpush3.bf16.msra.mxu0 %v794_v21 }
  0x1e   :  { %799 = vmatprep.subr.bf16.mxu0 %v798_v24 }
  0x21   :  { %801 = vmatpush3.bf16.msra.mxu0 %v798_v24 }
  0x24   :  { %745 = vmatmul.mubr.f32.vlgmr.msra.gmra.mrb[0].mxu0 %v30_v25 }
  0x25   :  { %747 = vmatprep.mubr.f32.mxu0 %v31_v26 }
  0x28   :  { %748 = vmatmul.mubr.f32.gmra.mrb[2].mxu0 %v32_v27 }
  0xf7   :  { %v746_v29 = vpop.f32.mrb[0].mxu0 }
  0xf8   :  { %v154_v30 = vsel %vm134_vm1, %v746_v29, -inf  ;;  %v115_v31 = vpop.f32.mrb[1].mxu0 }
  0xf9   :  { %v155_v32 = vrot.slane %v154_v30, 4  ;;  %v135_v33 = vsel %vm134_vm1, %v115_v31, -inf }
  0xfa   :  { %v136_v34 = vrot.slane %v135_v33, 4 }
  0xfb   :  { %v156_v35 = vmax.f32 %v154_v30, %v155_v32  ;;  %v749_v36 = vpop.f32.mrb[2].mxu0 }
  0xfc   :  { %v137_v37 = vmax.f32 %v135_v33, %v136_v34  ;;  %v192_v38 = vsel %vm134_vm1, %v749_v36, -inf  ;;  %v125_v39 = vpop.f32.mrb[3].mxu0 }
  0xfd   :  { %v157_v40 = vrot.slane %v156_v35, 2  ;;  %v193_v41 = vrot.slane %v192_v38, 4  ;;  %v173_v42 = vsel %vm134_vm1, %v125_v39, -inf }
  0xfe   :  { %v138_v43 = vrot.slane %v137_v37, 2  ;;  %v174_v44 = vrot.slane %v173_v42, 4 }
  0xff   :  { %v158_v45 = vmax.f32 %v156_v35, %v157_v40  ;;  %v194_v46 = vmax.f32 %v192_v38, %v193_v41 }
 0x100   :  { %v139_v47 = vmax.f32 %v137_v37, %v138_v43  ;;  %v175_v48 = vmax.f32 %v173_v42, %v174_v44 }
 0x101   :  { %v159_v49 = vrot.slane %v158_v45, 1  ;;  %v195_v50 = vrot.slane %v194_v46, 2 }
 0x102   :  { %v140_v51 = vrot.slane %v139_v47, 1  ;;  %v176_v52 = vrot.slane %v175_v48, 2 }
 0x103   :  { %v160_v53 = vmax.f32 %v158_v45, %v159_v49  ;;  %v196_v54 = vmax.f32 %v194_v46, %v195_v50  ;;  %v354_v45 = vld [vmem:[%s1103_s2 + $0x8] sm:$0xff]  ;;  %v356_v46 = vld [vmem:[%s1103_s2 + $0x18] sm:$0xff]  ;;  %v353_v50 = vld [vmem:[%s1103_s2] sm:$0xff] }
 0x104   :  { %v141_v55 = vmax.f32 %v139_v47, %v140_v51  ;;  %v177_v56 = vmax.f32 %v175_v48, %v176_v52  ;;  %v810_v49 = vpack.c.bf16 %v356_v46, %v354_v45  ;;  %v355_v51 = vld [vmem:[%s1103_s2 + $0x10] sm:$0xff]  ;;  %v216_v52 = vld [vmem:[%s1104_s3 + $0x8] sm:$0xff]  ;;  %s653_s2 = sshll.u32 %s877_s21, 4  ;;  %s654_s2 = int_to_ptr.vmem [resolvable:$true] %s653_s2 }
 0x105   :  { %v161_v57 = vsub.f32 %v746_v29, %v160_v53  ;;  %v197_v58 = vrot.slane %v196_v54, 1  ;;  %v812_v53 = vpack.c.bf16 %v355_v51, %v353_v50  ;;  %s851_s22 = scalar_lea.vmem %s654_s2, 128  ;;  %p856_p1 = scmp.lt.s32.totalorder %s654_s2, %s654_s2 }
 0x106   :  { %v142_v59 = vsub.f32 %v115_v31, %v141_v55  ;;  %v178_v60 = vrot.slane %v177_v56, 1  ;;  %v218_v55 = vld [vmem:[%s1104_s3 + $0x18] sm:$0xff]  ;;  %p852_p0 = scmp.ne.s32.totalorder %s654_s2, %s851_s22  ;;  %p857_p2 = scmp.lt.s32.totalorder %s851_s22, %s851_s22 }
 0x107   :  { %v162_v61 = vmul.f32 1.442695, %v161_v57  ;;  %v198_v62 = vmax.f32 %v196_v54, %v197_v58  ;;  %v217_v54 = vld [vmem:[%s1104_s3 + $0x10] sm:$0xff]  ;;  %v220_v57 = vld [vmem:[%s1104_s3 + $0x28] sm:$0xff] }
 0x108   :  { %v143_v63 = vmul.f32 1.442695, %v142_v59  ;;  %v179_v0 = vmax.f32 %v177_v56, %v178_v60  ;;  %v219_v56 = vld [vmem:[%s1104_s3 + $0x20] sm:$0xff]  ;;  %v221_v58 = vld [vmem:[%s1104_s3 + $0x30] sm:$0xff]  ;;  %v222_v59 = vld [vmem:[%s1104_s3 + $0x38] sm:$0xff]  ;;  %v875_v60 = vmov 0.0   ;;  %p858_p3 = por %p857_p2, %p856_p1 }
 0x109   :  { %835 = vpow2.f32 %v162_v61  ;;  %v199_v1 = vsub.f32 %v749_v36, %v198_v62  ;;  %633 = vmatprep.mubr.f32.mxu0 %v875_v60  ;;  %v357_v61 = vld [vmem:[%s1105_s4] sm:$0xff]  ;;  %v359_v62 = vld [vmem:[%s1105_s4 + $0x10] sm:$0xff] }
 0x10a   :  { %837 = vpow2.f32 %v143_v63  ;;  %v180_v2 = vsub.f32 %v125_v39, %v179_v0  ;;  %v876_v63 = vmov 0   ;;  %v358_v0 = vld [vmem:[%s1105_s4 + $0x8] sm:$0xff]  ;;  %p859_p4 = pnand %p858_p3, %p852_p0 }
 0x10b   :  { %v200_v3 = vmul.f32 1.442695, %v199_v1  ;;  %833 = vset.pattern.permute.xlu0 %v876_v63  ;;  %834 = vset.pattern.permute.xlu1 %v876_v63  ;;  %v360_v1 = vld [vmem:[%s1105_s4 + $0x18] sm:$0xff] }
 0x10c   :  { %v181_v4 = vmul.f32 1.442695, %v180_v2  ;;  %367 = vperm.xlu0 %833, %v357_v61   ;;  %377 = vperm.xlu1 %834, %v359_v62   ;;  %v361_v2 = vld [vmem:[%s1105_s4 + $0x20] sm:$0xff] }
 0x10d   :  { %839 = vpow2.f32 %v200_v3  ;;  %v362_v3 = vld [vmem:[%s1105_s4 + $0x28] sm:$0xff] }
 0x10e   :  { %841 = vpow2.f32 %v181_v4  ;;  %v363_v4 = vld [vmem:[%s1105_s4 + $0x30] sm:$0xff] }
 0x110   :  { %372 = vperm.xlu0 %833, %v358_v0   ;;  %382 = vperm.xlu1 %834, %v360_v1  }
 0x113   :  { %v836_v5 = vpop.eup %835 }
 0x114   :  { %v838_v6 = vpop.eup %837  ;;  %v164_v7 = vsel %vm134_vm1, %v836_v5, 0.0  ;;  %387 = vperm.xlu0 %833, %v361_v2   ;;  %392 = vperm.xlu1 %834, %v362_v3  }
 0x115   :  { %v165_v8 = vrot.slane %v164_v7, 4  ;;  %v145_v9 = vsel %vm134_vm1, %v838_v6, 0.0 }
 0x116   :  { %v146_v10 = vrot.slane %v145_v9, 4 }
 0x117   :  { %v840_v11 = vpop.eup %839  ;;  %v166_v12 = vadd.f32 %v165_v8, %v164_v7 }
 0x118   :  { %v842_v13 = vpop.eup %841  ;;  %v147_v14 = vadd.f32 %v146_v10, %v145_v9  ;;  %v202_v15 = vsel %vm134_vm1, %v840_v11, 0.0  ;;  %397 = vperm.xlu0 %833, %v363_v4  }
 0x119   :  { %v167_v16 = vrot.slane %v166_v12, 2  ;;  %v203_v17 = vrot.slane %v202_v15, 4  ;;  %v183_v18 = vsel %vm134_vm1, %v842_v13, 0.0 }
 0x11a   :  { %v148_v19 = vrot.slane %v147_v14, 2  ;;  %v184_v20 = vrot.slane %v183_v18, 4 }
 0x11b   :  { %v168_v21 = vadd.f32 %v167_v16, %v166_v12  ;;  %v204_v22 = vadd.f32 %v203_v17, %v202_v15 }
 0x11c   :  { %v149_v23 = vadd.f32 %v148_v19, %v147_v14  ;;  %v185_v24 = vadd.f32 %v184_v20, %v183_v18 }
 0x11d   :  { %v205_v25 = vrot.slane %v204_v22, 2  ;;  %v169_v26 = vrot.slane %v168_v21, 1 }
 0x11e   :  { %v186_v27 = vrot.slane %v185_v24, 2  ;;  %v150_v28 = vrot.slane %v149_v23, 1 }
 0x11f   :  { %v206_v29 = vadd.f32 %v205_v25, %v204_v22  ;;  %v170_v30 = vadd.f32 %v169_v26, %v168_v21 }
 0x120   :  { %v187_v31 = vadd.f32 %v186_v27, %v185_v24  ;;  %v151_v32 = vadd.f32 %v150_v28, %v149_v23 }
 0x121   :  { %v207_v33 = vrot.slane %v206_v29, 1  ;;  %843 = vrcp.f32 %v170_v30 }
 0x122   :  { %v188_v34 = vrot.slane %v187_v31, 1  ;;  %845 = vrcp.f32 %v151_v32 }
 0x123   :  { %v208_v35 = vadd.f32 %v207_v33, %v206_v29 }
 0x124   :  { %v189_v36 = vadd.f32 %v188_v34, %v187_v31 }
 0x125   :  { %847 = vrcp.f32 %v208_v35 }
 0x126   :  { %849 = vrcp.f32 %v189_v36 }
 0x12b   :  { %v844_v37 = vpop.eup %843 }
 0x12c   :  { %v846_v38 = vpop.eup %845  ;;  %v172_v39 = vmul.f32 %v844_v37, %v836_v5  ;;  %v364_v5 = vld [vmem:[%s1105_s4 + $0x38] sm:$0xff] }
 0x12d   :  { %v153_v40 = vmul.f32 %v846_v38, %v838_v6  ;;  %402 = vperm.xlu1 %834, %v364_v5   ;;  %v559_v6 = vld [vmem:[%s1107_s6] sm:$0xf] }
 0x12e   :  { %212 = vst.msk [vmem:[%s1108_s7 + $0x8] sm:$0xff] %vm134_vm1, %v172_v39  ;;  %562 = vperm.xlu0 %833, %v559_v6  }
 0x12f   :  { %v848_v41 = vpop.eup %847  ;;  %211 = vst.msk [vmem:[%s1108_s7] sm:$0xff] %vm134_vm1, %v153_v40  ;;  %v802_v42 = vpack.c.bf16 %v172_v39, %v153_v40 }
 0x130   :  { %v850_v43 = vpop.eup %849  ;;  %v210_v44 = vmul.f32 %v848_v41, %v840_v11 }
 0x131   :  { %803 = vmatprep.subr.bf16.mxu1 %v802_v42  ;;  %v191_v47 = vmul.f32 %v850_v43, %v842_v13 }
 0x132   :  { %805 = vmatpush3.bf16.msra.mxu1 %v802_v42  ;;  %214 = vst.msk [vmem:[%s1108_s7 + $0x18] sm:$0xff] %vm134_vm1, %v210_v44 }
 0x133   :  { %213 = vst.msk [vmem:[%s1108_s7 + $0x10] sm:$0xff] %vm134_vm1, %v191_v47  ;;  %v806_v48 = vpack.c.bf16 %v210_v44, %v191_v47 }
 0x135   :  { %807 = vmatprep.subr.bf16.mxu1 %v806_v48 }
 0x136   :  { %809 = vmatpush3.bf16.msra.mxu1 %v806_v48 }
 0x137   :  { %811 = vmatprep.subr.bf16.mxu1 %v810_v49 }
 0x139   :  { %759 = vmatmul.mubr.msk.f32.vlgmr.msra.gmra.mrb[0].mxu1 %vm223_vm0, %v216_v52 }
 0x13a   :  { %761 = vmatprep.mubr.msk.f32.mxu1 %vm223_vm0, %v217_v54  ;;  %813 = vmatpush1.bf16.msra.mxu1 %v812_v53 }
 0x13d   :  { %762 = vmatmul.mubr.msk.f32.gmra.mrb[2].mxu1 %vm223_vm0, %v218_v55 }
 0x13e   :  { %764 = vmatprep.mubr.msk.f32.mxu1 %vm223_vm0, %v219_v56 }
 0x141   :  { %765 = vmatmul.mubr.msk.f32.gmra.mrb[4].mxu1 %vm223_vm0, %v220_v57 }
 0x142   :  { %767 = vmatprep.mubr.msk.f32.mxu1 %vm223_vm0, %v221_v58 }
 0x145   :  { %768 = vmatmul.mubr.msk.f32.gmra.mrb[6].mxu1 %vm223_vm0, %v222_v59 }
 0x146   :  { %493 = vmatprep.mubr.f32.mxu1 %v875_v60 }
 0x18b   :  { %v368_v15 = vpop.permute.xlu0 %367  ;;  %v378_v24 = vpop.permute.xlu1 %377 }
 0x18f   :  { %v373_v19 = vpop.permute.xlu0 %372  ;;  %v383_v35 = vpop.permute.xlu1 %382 }
 0x193   :  { %v388_v48 = vpop.permute.xlu0 %387  ;;  %v393_v51 = vpop.permute.xlu1 %392 }
 0x197   :  { %v398_v0 = vpop.permute.xlu0 %397 }
 0x1ac   :  { %v403_v3 = vpop.permute.xlu1 %402 }
 0x20c   :  { %v760_v7 = vpop.f32.mrb[0].mxu1 }
 0x20d   :  { %v314_v8 = vpop.f32.mrb[1].mxu1 }
 0x20e   :  { %671 = vmatmul.mubr.msk.f32.vlgmr.msra.gmra.mrb[8].mxu1 %vm134_vm1, %v314_v8 }
 0x20f   :  { %499 = vmatprep.mubr.f32.mxu1 %v875_v60 }
 0x210   :  { %v763_v9 = vpop.f32.mrb[2].mxu1 }
 0x211   :  { %v324_v10 = vpop.f32.mrb[3].mxu1 }
 0x212   :  { %672 = vmatmul.mubr.msk.f32.gmra.mrb[10].mxu1 %vm134_vm1, %v760_v7 }
 0x213   :  { %505 = vmatprep.mubr.f32.mxu1 %v875_v60 }
 0x214   :  { %v766_v11 = vpop.f32.mrb[4].mxu1 }
 0x215   :  { %v334_v12 = vpop.f32.mrb[5].mxu1 }
 0x216   :  { %673 = vmatmul.mubr.msk.f32.gmra.mrb[12].mxu1 %vm134_vm1, %v324_v10 }
 0x217   :  { %511 = vmatprep.mubr.f32.mxu1 %v875_v60 }
 0x218   :  { %v769_v13 = vpop.f32.mrb[6].mxu1 }
 0x219   :  { %v344_v14 = vpop.f32.mrb[7].mxu1 }
 0x21a   :  { %674 = vmatmul.mubr.msk.f32.gmra.mrb[14].mxu1 %vm134_vm1, %v763_v9 }
 0x21b   :  { %517 = vmatprep.mubr.f32.mxu1 %v875_v60 }
 0x21e   :  { %675 = vmatmul.mubr.msk.f32.gmra.mrb[16].mxu1 %vm134_vm1, %v334_v12 }
 0x21f   :  { %523 = vmatprep.mubr.f32.mxu1 %v875_v60 }
 0x222   :  { %676 = vmatmul.mubr.msk.f32.gmra.mrb[18].mxu1 %vm134_vm1, %v766_v11 }
 0x223   :  { %529 = vmatprep.mubr.f32.mxu1 %v875_v60 }
 0x226   :  { %677 = vmatmul.mubr.msk.f32.gmra.mrb[20].mxu1 %vm134_vm1, %v344_v14 }
 0x227   :  { %535 = vmatprep.mubr.f32.mxu1 %v875_v60 }
 0x22a   :  { %678 = vmatmul.mubr.msk.f32.gmra.mrb[22].mxu1 %vm134_vm1, %v769_v13 }
 0x2e1   :  { %v495_v16 = vpop.f32.mrb[8].mxu1 }
 0x2e2   :  { %v497_v17 = vpop.f32.mrb[9].mxu1  ;;  %v496_v18 = vadd.f32 %v495_v16, %v368_v15  ;;  %v563_v16 = vpop.permute.xlu0 %562 }
 0x2e3   :  { %v498_v20 = vadd.f32 %v497_v17, %v368_v15  ;;  %v558_v15 = vld [vmem:[%s1106_s5] sm:$0xf] }
 0x2e4   :  { %v542_v26 = vmax.f32 %v496_v18, 0.0 }
 0x2e5   :  { %v501_v21 = vpop.f32.mrb[10].mxu1  ;;  %v543_v28 = vmax.f32 %v498_v20, 0.0 }
 0x2e6   :  { %v502_v22 = vadd.f32 %v501_v21, %v373_v19  ;;  %v503_v23 = vpop.f32.mrb[11].mxu1 }
 0x2e7   :  { %v504_v25 = vadd.f32 %v503_v23, %v373_v19 }
 0x2e8   :  { %v544_v27 = vmax.f32 %v502_v22, 0.0 }
 0x2e9   :  { %v545_v29 = vmax.f32 %v504_v25, 0.0  ;;  %v507_v30 = vpop.f32.mrb[12].mxu1 }
 0x2ea   :  { %v816_v31 = vpack.c.bf16 %v544_v27, %v542_v26  ;;  %v509_v32 = vpop.f32.mrb[13].mxu1  ;;  %v508_v34 = vadd.f32 %v507_v30, %v378_v24 }
 0x2eb   :  { %v814_v33 = vpack.c.bf16 %v545_v29, %v543_v28  ;;  %v510_v36 = vadd.f32 %v509_v32, %v378_v24 }
 0x2ec   :  { %v546_v41 = vmax.f32 %v508_v34, 0.0 }
 0x2ed   :  { %v513_v37 = vpop.f32.mrb[14].mxu1  ;;  %815 = vmatprep.subr.bf16.mxu0 %v814_v33  ;;  %v547_v43 = vmax.f32 %v510_v36, 0.0 }
 0x2ee   :  { %v514_v38 = vadd.f32 %v513_v37, %v383_v35  ;;  %v515_v39 = vpop.f32.mrb[15].mxu1  ;;  %817 = vmatpush1.bf16.msra.mxu0 %v816_v31 }
 0x2ef   :  { %v516_v40 = vadd.f32 %v515_v39, %v383_v35 }
 0x2f0   :  { %v548_v42 = vmax.f32 %v514_v38, 0.0 }
 0x2f1   :  { %v549_v44 = vmax.f32 %v516_v40, 0.0  ;;  %v519_v45 = vpop.f32.mrb[16].mxu1 }
 0x2f2   :  { %v820_v46 = vpack.c.bf16 %v548_v42, %v546_v41  ;;  %v521_v47 = vpop.f32.mrb[17].mxu1  ;;  %v520_v50 = vadd.f32 %v519_v45, %v388_v48 }
 0x2f3   :  { %v818_v49 = vpack.c.bf16 %v549_v44, %v547_v43  ;;  %v522_v52 = vadd.f32 %v521_v47, %v388_v48 }
 0x2f4   :  { %v550_v57 = vmax.f32 %v520_v50, 0.0 }
 0x2f5   :  { %v525_v53 = vpop.f32.mrb[18].mxu1  ;;  %819 = vmatprep.subr.bf16.mxu0 %v818_v49  ;;  %v551_v59 = vmax.f32 %v522_v52, 0.0 }
 0x2f6   :  { %v526_v54 = vadd.f32 %v525_v53, %v393_v51  ;;  %v527_v55 = vpop.f32.mrb[19].mxu1  ;;  %821 = vmatpush1.bf16.msra.mxu0 %v820_v46 }
 0x2f7   :  { %v528_v56 = vadd.f32 %v527_v55, %v393_v51 }
 0x2f8   :  { %v552_v58 = vmax.f32 %v526_v54, 0.0 }
 0x2f9   :  { %v553_v60 = vmax.f32 %v528_v56, 0.0  ;;  %v531_v61 = vpop.f32.mrb[20].mxu1 }
 0x2fa   :  { %v824_v62 = vpack.c.bf16 %v552_v58, %v550_v57  ;;  %v533_v63 = vpop.f32.mrb[21].mxu1  ;;  %v532_v2 = vadd.f32 %v531_v61, %v398_v0 }
 0x2fb   :  { %v822_v1 = vpack.c.bf16 %v553_v60, %v551_v59  ;;  %v534_v4 = vadd.f32 %v533_v63, %v398_v0 }
 0x2fc   :  { %v554_v9 = vmax.f32 %v532_v2, 0.0 }
 0x2fd   :  { %v537_v5 = vpop.f32.mrb[22].mxu1  ;;  %823 = vmatprep.subr.bf16.mxu0 %v822_v1  ;;  %v555_v11 = vmax.f32 %v534_v4, 0.0 }
 0x2fe   :  { %v538_v6 = vadd.f32 %v537_v5, %v403_v3  ;;  %v539_v7 = vpop.f32.mrb[23].mxu1  ;;  %825 = vmatpush1.bf16.msra.mxu0 %v824_v62 }
 0x2ff   :  { %v540_v8 = vadd.f32 %v539_v7, %v403_v3 }
 0x300   :  { %v556_v10 = vmax.f32 %v538_v6, 0.0 }
 0x301   :  { %v557_v12 = vmax.f32 %v540_v8, 0.0 }
 0x302   :  { %v828_v13 = vpack.c.bf16 %v556_v10, %v554_v9 }
 0x303   :  { %v826_v14 = vpack.c.bf16 %v557_v12, %v555_v11 }
 0x305   :  { %827 = vmatprep.subr.bf16.mxu0 %v826_v14 }
 0x306   :  { %829 = vmatpush1.bf16.msra.mxu0 %v828_v13 }
 0x309   :  { %679 = vmatmul.mubr.msk.f32.vlgmr.msra.gmra.mrb[4].mxu0 %vm565_vm2, %v558_v15 }
 0x3dc   :  { %v635_v17 = vpop.f32.mrb[4].mxu0 }
 0x3dd   :  { %v636_v18 = vadd.f32 %v635_v17, %v563_v16  ;;  %v637_v19 = vpop.f32.mrb[5].mxu0 }
 0x3de   :  { %v638_v20 = vadd.f32 %v637_v19, %v563_v16 }
 0x3e0   :  { %v642_v21 = vcombine.low %v636_v18, %v638_v20 }
 0x3e2   :  { %644 = vst [vmem:[#allocation2] sm:$0xff] %v642_v21 }
 0x3e3   :  { %862 = shalt.err (!%p859_p4)
}
 0x3e4   :  { %s863_s23 = scalar_lea.hbm %s1109_s8, 128 }
 0x3e5   :  { %p864_p5 = scmp.ne.s32.totalorder %s1109_s8, %s863_s23  ;;  %p867_p6 = scmp.lt.u32.totalorder %s863_s23, %s1109_s8 }
 0x3e7   :  { %p869_p7 = pnand %p867_p6, %p864_p5 }
 0x3e9   :  { %872 = shalt.err (!%p869_p7)
}
 0x3ea   :  { %656 = dma.vmem_to_hbm [thread:$0]  %s654_s2, 128, %s1109_s8, [#allocation3]  }
 0x3eb   :  { %873 = dma.done.wait [#allocation3], 128  }
 0x3ec   :  { %874 = vsyncadd [#allocation3], 4294967168 }
 0x3ed   :  { %662 = vsyncpa [#allocation3], 1 }

</bundles_post_ra>
